<compile_context>
chip_gen: v7x
topology: tpu7x:2x2x1
jax: 0.10.0
libtpu: 0.0.40
codegen_flags: <defaults>
</compile_context>

<pallas_src>
import jax
import jax.numpy as jnp
import numpy as np
from jax.experimental import pallas as pl
from jax.experimental.pallas import tpu as pltpu


def tap_estimator_kernel(x_ref, *refs):
    """refs = (w0, b0, w1, b1, ..., wk, bk, out_ref).

    x_ref:   (tb, 4n) bf16 batch tile.
    Weights: bf16 (in, out); biases: f32 (1, out).
    One fused MLP pass; every matmul accumulates in f32 on the MXU.
    """
    o_ref = refs[-1]
    p = refs[:-1]
    n_layers = len(p) // 2

    h = x_ref[...]                                    # bf16 (tb, 4n)
    for li in range(n_layers):
        w = p[2 * li][...]                            # bf16 (in, out)
        b = p[2 * li + 1][...]                        # f32  (1, out)
        h = jnp.dot(h, w, preferred_element_type=jnp.float32) + b
        if li == n_layers - 1:
            h = jnp.tanh(h)                           # final activation, f32
        else:
            # relu in f32, then back to bf16 for the next MXU pass.
            h = jnp.maximum(h, 0.0).astype(w.dtype)

    # T (tap_size) is usually << 128 lanes -> masked vst; writeback volume is
    # tiny so a lane-padded output slab was deliberately not added.
    o_ref[...] = h.astype(o_ref.dtype)


def _choose_batch_tile(B, block_b):
    """128-aligned batch tile; >= 2 tiles for moderate/large B (v7x megacore)."""
    if B <= 128:
        return B                              # single tile == full batch axis
    block_b = max(128, (block_b // 128) * 128)
    half = -(-B // 2)                         # aim for a 2-way split first
    tb = -(-half // 128) * 128                # round up to a multiple of 128
    return min(block_b, tb)


def make_tap_estimator(params, *, block_b=512):
    """Prepare weights once and return a jitted forward(send, recv) -> (B, T).

    params = (w0, b0, w1, b1, ..., wk, bk) with weights stored as (in, out)
    and biases as (1, out).  NOTE: real PyTorch nn.Linear weights are
    (out, in) -- transpose real checkpoints before passing them here.
    """
    w0, b0 = params[0], params[1]
    F4, H0 = w0.shape                         # F4 = 4 * seq_size
    n = F4 // 4
    T = params[-2].shape[1]

    # PyTorch's cat+view interleaves features as (send0, send1, recv0, recv1)
    # per position j (x_flat[:, 4j+c]).  Reorder W0's rows so that the kernel
    # input x = concat([send.reshape(B,2n), recv.reshape(B,2n)], -1) multiplies
    # matching rows:  x @ w0_r == x_interleaved @ w0.
    w0_g = jnp.asarray(w0, jnp.float32).reshape(n, 4, H0)
    w0_r = jnp.concatenate([w0_g[:, 0:2, :].reshape(2 * n, H0),
                            w0_g[:, 2:4, :].reshape(2 * n, H0)], axis=0)

    prepared = [w0_r.astype(jnp.bfloat16), jnp.asarray(b0, jnp.float32)]
    for i in range(2, len(params), 2):
        prepared.append(jnp.asarray(params[i]).astype(jnp.bfloat16))
        prepared.append(jnp.asarray(params[i + 1], jnp.float32))
    prepared = [jax.device_put(a) for a in prepared]  # one-time prep / residency

    # Grid-invariant weight/bias specs (block == full array, index fixed at 0).
    # Single-buffering them (pipeline_mode=pl.Buffered(1)) was skipped: the
    # whole bf16 parameter set is only ~0.2 MB, negligible even on v7x VMEM.
    weight_specs = [pl.BlockSpec(a.shape, lambda i: (0, 0)) for a in prepared]

    @jax.jit
    def forward(send, recv):
        B = send.shape[0]
        x = jnp.concatenate([send.reshape(B, 2 * n), recv.reshape(B, 2 * n)],
                            axis=-1).astype(jnp.bfloat16)          # (B, 4n)

        tb = _choose_batch_tile(B, block_b)
        n_tiles = -(-B // tb)
        Bp = n_tiles * tb
        if Bp != B:                                                # zero rows,
            x = jnp.pad(x, ((0, Bp - B), (0, 0)))                  # sliced off below

        out = pl.pallas_call(
            tap_estimator_kernel,
            out_shape=jax.ShapeDtypeStruct((Bp, T), jnp.float32),
            grid_spec=pltpu.PrefetchScalarGridSpec(
                num_scalar_prefetch=0,
                grid=(n_tiles,),
                in_specs=[pl.BlockSpec((tb, F4), lambda i: (i, 0))] + weight_specs,
                out_specs=pl.BlockSpec((tb, T), lambda i: (i, 0)),
            ),
            compiler_params=pltpu.CompilerParams(
                dimension_semantics=("parallel",)),
        )(x, *prepared)
        return out[:B]

    return forward


def init_params(key, seq_size, tap_size, middles=(300, 300)):
    """Deterministic synthetic parameters matching TapEstimator.__init__.
    Weights stored as (in, out); biases as (1, out); all f32."""
    dims = (seq_size * 4,) + tuple(middles) + (tap_size,)
    ks = jax.random.split(key, 2 * (len(dims) - 1))
    params = []
    for i in range(len(dims) - 1):
        w = jax.random.normal(ks[2 * i], (dims[i], dims[i + 1]), jnp.float32) * 0.1
        b = jax.random.normal(ks[2 * i + 1], (1, dims[i + 1]), jnp.float32) * 0.1
        params += [w, b]
    return tuple(params)


def reference_forward_f32(send, recv, params):
    """Pure-JAX f32 reference mirroring the PyTorch forward exactly."""
    x = jnp.concatenate([send, recv], axis=-1)        # (B, n, 4)
    x = x.reshape(x.shape[0], -1)                     # (B, 4n)  == torch .view
    hp = jax.lax.Precision.HIGHEST
    n_layers = len(params) // 2
    for i in range(n_layers):
        w, b = params[2 * i], params[2 * i + 1]
        x = jnp.dot(x, w, precision=hp) + b
        x = jnp.tanh(x) if i == n_layers - 1 else jax.nn.relu(x)
    return x


def reference_forward_bf16(send, recv, params):
    """Pure-JAX reference with the kernel's numerics: bf16 matmul inputs,
    f32 accumulation, f32 elementwise.  Used for the tight correctness check."""
    x = jnp.concatenate([send, recv], axis=-1).reshape(send.shape[0], -1)
    n_layers = len(params) // 2
    for i in range(n_layers):
        w, b = params[2 * i], params[2 * i + 1]
        x = jnp.dot(x.astype(jnp.bfloat16), w.astype(jnp.bfloat16),
                    preferred_element_type=jnp.float32) + b.astype(jnp.float32)
        x = jnp.tanh(x) if i == n_layers - 1 else jax.nn.relu(x)
    return x


if __name__ == "__main__":
    key = jax.random.PRNGKey(0)
    k_send, k_recv, k_param, k_big = jax.random.split(key, 4)

    seq_size, tap_size = 16, 5
    params = init_params(k_param, seq_size, tap_size, middles=(300, 300))
    forward = make_tap_estimator(params)

    # Small batch (matches the module docstring shapes): single full-batch tile.
    B = 2
    send = jax.random.normal(k_send, (B, seq_size, 2), jnp.float32)
    recv = jax.random.normal(k_recv, (B, seq_size, 2), jnp.float32)
    out = forward(send, recv)
    jax.block_until_ready(out)

    # Tight check against a reference with identical (bf16-matmul) numerics.
    np.testing.assert_allclose(
        np.asarray(out), np.asarray(reference_forward_bf16(send, recv, params)),
        rtol=1e-3, atol=1e-3)
    # Sanity check against the exact f32 PyTorch-style forward (difference is
    # dominated by the bf16 rounding of the matmul inputs).
    np.testing.assert_allclose(
        np.asarray(out), np.asarray(reference_forward_f32(send, recv, params)),
        rtol=5e-2, atol=5e-2)

    # Larger batch: exercises the 128-aligned multi-tile grid (>= 2 parallel
    # tiles for v7x) and the zero-padded batch tail.
    B2 = 600
    kb1, kb2 = jax.random.split(k_big)
    send2 = jax.random.normal(kb1, (B2, seq_size, 2), jnp.float32)
    recv2 = jax.random.normal(kb2, (B2, seq_size, 2), jnp.float32)
    out2 = forward(send2, recv2)
    jax.block_until_ready(out2)
    np.testing.assert_allclose(
        np.asarray(out2), np.asarray(reference_forward_bf16(send2, recv2, params)),
        rtol=1e-3, atol=1e-3)

    # TODO(synk): estimate_tap() is eval()/to_torch/to_numpy host plumbing
    # around forward(), so it is intentionally not kernelized.
    print("KERNEL_OK")
</pallas_src>

<mosaic_0001>
module attributes {stable_mosaic.version = 11 : i64} {
  func.func @tap_estimator_kernel(%arg0: i32, %arg1: memref<2x64xbf16, #tpu.memory_space<vmem>>, %arg2: memref<64x300xbf16, #tpu.memory_space<vmem>>, %arg3: memref<1x300xf32, #tpu.memory_space<vmem>>, %arg4: memref<300x300xbf16, #tpu.memory_space<vmem>>, %arg5: memref<1x300xf32, #tpu.memory_space<vmem>>, %arg6: memref<300x5xbf16, #tpu.memory_space<vmem>>, %arg7: memref<1x5xf32, #tpu.memory_space<vmem>>, %arg8: memref<2x5xf32, #tpu.memory_space<vmem>>) attributes {dimension_semantics = [#tpu.dimension_semantics<parallel>], iteration_bounds = array<i64: 1>, scalar_prefetch = 0 : i64, scratch_operands = 0 : i64, tpu.core_type = #tpu.core_type<tc>, window_params = [{transform_indices = @transform_0, window_bounds = array<i64: 2, 64>}, {pipeline_mode = #tpu.pipeline_mode<synchronous>, transform_indices = @transform_1, window_bounds = array<i64: 64, 300>}, {pipeline_mode = #tpu.pipeline_mode<synchronous>, transform_indices = @transform_2, window_bounds = array<i64: 1, 300>}, {pipeline_mode = #tpu.pipeline_mode<synchronous>, transform_indices = @transform_3, window_bounds = array<i64: 300, 300>}, {pipeline_mode = #tpu.pipeline_mode<synchronous>, transform_indices = @transform_4, window_bounds = array<i64: 1, 300>}, {pipeline_mode = #tpu.pipeline_mode<synchronous>, transform_indices = @transform_5, window_bounds = array<i64: 300, 5>}, {pipeline_mode = #tpu.pipeline_mode<synchronous>, transform_indices = @transform_6, window_bounds = array<i64: 1, 5>}, {transform_indices = @transform_7, window_bounds = array<i64: 2, 5>}]} {
    %c0 = arith.constant 0 : index
    %c0_0 = arith.constant 0 : index
    %0 = vector.load %arg1[%c0, %c0_0] : memref<2x64xbf16, #tpu.memory_space<vmem>>, vector<2x64xbf16>
    %c0_1 = arith.constant 0 : index
    %c0_2 = arith.constant 0 : index
    %1 = vector.load %arg2[%c0_1, %c0_2] : memref<64x300xbf16, #tpu.memory_space<vmem>>, vector<64x300xbf16>
    %c0_3 = arith.constant 0 : index
    %c0_4 = arith.constant 0 : index
    %2 = vector.load %arg3[%c0_3, %c0_4] : memref<1x300xf32, #tpu.memory_space<vmem>>, vector<1x300xf32>
    %cst = arith.constant dense<0.000000e+00> : vector<2x300xf32>
    %3 = tpu.matmul %0, %1, %cst {dimension_numbers = #tpu.dot_dimension_numbers<[1], [0], [0], [1], [0, 0, 1, 1], [], []>} : vector<2x64xbf16>, vector<64x300xbf16>, vector<2x300xf32> -> vector<2x300xf32>
    %4 = vector.broadcast %2 : vector<1x300xf32> to vector<2x300xf32>
    %5 = arith.addf %3, %4 : vector<2x300xf32>
    %cst_5 = arith.constant 0.000000e+00 : f32
    %6 = vector.broadcast %cst_5 : f32 to vector<2x300xf32>
    %7 = arith.maximumf %5, %6 : vector<2x300xf32>
    %8 = arith.truncf %7 : vector<2x300xf32> to vector<2x300xbf16>
    %c0_6 = arith.constant 0 : index
    %c0_7 = arith.constant 0 : index
    %9 = vector.load %arg4[%c0_6, %c0_7] : memref<300x300xbf16, #tpu.memory_space<vmem>>, vector<300x300xbf16>
    %c0_8 = arith.constant 0 : index
    %c0_9 = arith.constant 0 : index
    %10 = vector.load %arg5[%c0_8, %c0_9] : memref<1x300xf32, #tpu.memory_space<vmem>>, vector<1x300xf32>
    %cst_10 = arith.constant dense<0.000000e+00> : vector<2x300xf32>
    %11 = tpu.matmul %8, %9, %cst_10 {dimension_numbers = #tpu.dot_dimension_numbers<[1], [0], [0], [1], [0, 0, 1, 1], [], []>} : vector<2x300xbf16>, vector<300x300xbf16>, vector<2x300xf32> -> vector<2x300xf32>
    %12 = vector.broadcast %10 : vector<1x300xf32> to vector<2x300xf32>
    %13 = arith.addf %11, %12 : vector<2x300xf32>
    %cst_11 = arith.constant 0.000000e+00 : f32
    %14 = vector.broadcast %cst_11 : f32 to vector<2x300xf32>
    %15 = arith.maximumf %13, %14 : vector<2x300xf32>
    %16 = arith.truncf %15 : vector<2x300xf32> to vector<2x300xbf16>
    %c0_12 = arith.constant 0 : index
    %c0_13 = arith.constant 0 : index
    %17 = vector.load %arg6[%c0_12, %c0_13] : memref<300x5xbf16, #tpu.memory_space<vmem>>, vector<300x5xbf16>
    %c0_14 = arith.constant 0 : index
    %c0_15 = arith.constant 0 : index
    %18 = vector.load %arg7[%c0_14, %c0_15] : memref<1x5xf32, #tpu.memory_space<vmem>>, vector<1x5xf32>
    %cst_16 = arith.constant dense<0.000000e+00> : vector<2x5xf32>
    %19 = tpu.matmul %16, %17, %cst_16 {dimension_numbers = #tpu.dot_dimension_numbers<[1], [0], [0], [1], [0, 0, 1, 1], [], []>} : vector<2x300xbf16>, vector<300x5xbf16>, vector<2x5xf32> -> vector<2x5xf32>
    %20 = vector.broadcast %18 : vector<1x5xf32> to vector<2x5xf32>
    %21 = arith.addf %19, %20 : vector<2x5xf32>
    %22 = math.tanh %21 : vector<2x5xf32>
    %c0_17 = arith.constant 0 : index
    %c0_18 = arith.constant 0 : index
    %23 = vector.load %arg8[%c0_17, %c0_18] : memref<2x5xf32, #tpu.memory_space<vmem>>, vector<2x5xf32>
    tpu.vector_store %arg8[%c0_17, %c0_18], %22 {strides = array<i32>} : memref<2x5xf32, #tpu.memory_space<vmem>>, vector<2x5xf32>,
    return
  }
  func.func @transform_0(%arg0: i32) -> (i32, i32) {
    %c0_i32 = arith.constant 0 : i32
    %c0_i32_0 = arith.constant 0 : i32
    return %arg0, %c0_i32 : i32, i32
  }
  func.func @transform_1(%arg0: i32) -> (i32, i32) {
    %c0_i32 = arith.constant 0 : i32
    %c0_i32_0 = arith.constant 0 : i32
    %c0_i32_1 = arith.constant 0 : i32
    return %c0_i32, %c0_i32_0 : i32, i32
  }
  func.func @transform_2(%arg0: i32) -> (i32, i32) {
    %c0_i32 = arith.constant 0 : i32
    %c0_i32_0 = arith.constant 0 : i32
    %c0_i32_1 = arith.constant 0 : i32
    return %c0_i32, %c0_i32_0 : i32, i32
  }
  func.func @transform_3(%arg0: i32) -> (i32, i32) {
    %c0_i32 = arith.constant 0 : i32
    %c0_i32_0 = arith.constant 0 : i32
    %c0_i32_1 = arith.constant 0 : i32
    return %c0_i32, %c0_i32_0 : i32, i32
  }
  func.func @transform_4(%arg0: i32) -> (i32, i32) {
    %c0_i32 = arith.constant 0 : i32
    %c0_i32_0 = arith.constant 0 : i32
    %c0_i32_1 = arith.constant 0 : i32
    return %c0_i32, %c0_i32_0 : i32, i32
  }
  func.func @transform_5(%arg0: i32) -> (i32, i32) {
    %c0_i32 = arith.constant 0 : i32
    %c0_i32_0 = arith.constant 0 : i32
    %c0_i32_1 = arith.constant 0 : i32
    return %c0_i32, %c0_i32_0 : i32, i32
  }
  func.func @transform_6(%arg0: i32) -> (i32, i32) {
    %c0_i32 = arith.constant 0 : i32
    %c0_i32_0 = arith.constant 0 : i32
    %c0_i32_1 = arith.constant 0 : i32
    return %c0_i32, %c0_i32_0 : i32, i32
  }
  func.func @transform_7(%arg0: i32) -> (i32, i32) {
    %c0_i32 = arith.constant 0 : i32
    %c0_i32_0 = arith.constant 0 : i32
    return %arg0, %c0_i32 : i32, i32
  }
}

</mosaic_0001>

<bundles_post_ra>
// kernel: forward.1
= control target key start
LH: loop header
LB: loop body
LE: loop exit
PB: predicated region body
PF: predicated region fallthrough
CT: control target
= control target key end

     0   :  { %12 = vsyncpa [#allocation3], 0  ;;  %s1645_s0 = inlined_call_operand.vmem [shape: bf16[2,64], index: 0, kind: input, shape index: {}]   ;;  %s1646_s1 = inlined_call_operand.vmem [shape: bf16[64,300], index: 1, kind: input, shape index: {}]   ;;  %s1647_s2 = inlined_call_operand.vmem [shape: f32[1,300], index: 2, kind: input, shape index: {}]   ;;  %s1648_s3 = inlined_call_operand.hbm [shape: bf16[300,300], index: 3, kind: input, shape index: {}]   ;;  %s1649_s4 = inlined_call_operand.vmem [shape: f32[1,300], index: 4, kind: input, shape index: {}]   ;;  %s1650_s5 = inlined_call_operand.vmem [shape: bf16[300,5], index: 5, kind: input, shape index: {}]   ;;  %s1651_s6 = inlined_call_operand.vmem [shape: f32[1,5], index: 6, kind: input, shape index: {}]   ;;  %s1652_s7 = inlined_call_operand.hbm [shape: f32[2,5], index: 7, kind: output, shape index: {}]  }
   0x1   :  { %13 = vsyncpa [#allocation4], 0  ;;  %s1427_s24 = smov [#allocation2]   ;;  %s1379_s28 = scalar_lea.hbm %s1648_s3, 7296 }
   0x2   :  { %s25_s25 = sshll.u32 %s1427_s24, 4  ;;  %p1380_p0 = scmp.ne.s32.totalorder %s1648_s3, %s1379_s28  ;;  %s26_s25 = int_to_ptr.vmem [resolvable:$true] %s25_s25 }
   0x3   :  { %p1383_p1 = scmp.lt.u32.totalorder %s1379_s28, %s1648_s3 }
   0x5   :  { %p1385_p2 = pnand %p1383_p1, %p1380_p0 }
   0x7   :  { %1388 = shalt.err (!%p1385_p2)
}
   0x8   :  { %s1389_s10 = scalar_lea.vmem %s26_s25, 7296  ;;  %p1394_p4 = scmp.lt.s32.totalorder %s26_s25, %s26_s25 }
   0x9   :  { %p1390_p3 = scmp.ne.s32.totalorder %s26_s25, %s1389_s10  ;;  %p1395_p5 = scmp.lt.s32.totalorder %s1389_s10, %s1389_s10 }
   0xb   :  { %p1396_p6 = por %p1395_p5, %p1394_p4 }
   0xd   :  { %p1397_p7 = pnand %p1396_p6, %p1390_p3 }
   0xf   :  { %1400 = shalt.err (!%p1397_p7)
}
  0x10   :  { %s1428_s11 = smov 192   ;;  %s1429_s12 = smov 12  }
  0x11   :  { %31 = dma.hbm_to_vmem [thread:$0]  %s1648_s3, 7296, %s26_s25, [#allocation3], %s1428_s11, %s1428_s11, %s1429_s12  }
  0x12   :  { %1423 = dma.done.wait [#allocation3], 7296  }
  0x13   :  { %1424 = vsyncadd [#allocation3], 4294960000  ;;  %v1430_v0 = vmov 0.0   ;;  %v1431_v1 = vmov 0   ;;  %vm1432_vm0 = vmmov 0   ;;  %vm140_vm1 = vcmask 523264  }
  0x14   :  { %1221 = vmatprep.subr.bf16.mxu1 %v1430_v0  ;;  %176 = vmatprep.mubr.bf16.mxu0 %v1431_v1  ;;  %v1266_v2 = vld [vmem:[%s1646_s1 + $0x4] ss:$12 sps:$4 sm:$0xff]   ;;  %v1268_v3 = vld [vmem:[%s1646_s1] ss:$12 sps:$4 sm:$0xff]   ;;  %v1269_v4 = vld [vmem:[%s1646_s1 + $0x1c] ss:$12 sps:$4 sm:$0xff]  }
  0x15   :  { %1229 = vmatprep.mubr.msk.bf16.mxu1 %vm1432_vm0, %v1430_v0  ;;  %144 = vmatprep.subr.bf16.mxu0 %v1266_v2  ;;  %v1271_v5 = vld [vmem:[%s1646_s1 + $0x18] ss:$12 sps:$4 sm:$0xff]   ;;  %v1272_v6 = vld [vmem:[%s1646_s1 + $0x34] ss:$12 sps:$4 sm:$0xff]   ;;  %v1274_v8 = vld [vmem:[%s1646_s1 + $0x30] ss:$12 sps:$4 sm:$0xff]   ;;  %v61_v2 = vlaneseq }
  0x16   :  { %145 = vmatpush1.bf16.msra.mxu0 %v1268_v3  ;;  %v1277_v7 = vld [vmem:[%s1646_s1 + $0x8] ss:$12 sps:$4 sm:$0xff]   ;;  %v1279_v9 = vld [vmem:[%s1646_s1 + $0x20] ss:$12 sps:$4 sm:$0xff]   ;;  %v1280_v12 = vld [vmem:[%s1646_s1 + $0x38] ss:$12 sps:$4 sm:$0xff]  }
  0x17   :  { %146 = vmatprep.subr.bf16.mxu0 %v1269_v4  ;;  %1222 = vmatpush3.bf16.msra.mxu1 %v1277_v7  ;;  %v1275_v10 = vld [vmem:[%s1646_s1 + $0x4c] ss:$12 sps:$4 sm:$0xff]   ;;  %v1278_v11 = vld [vmem:[%s1646_s1 + $0x48] ss:$12 sps:$4 sm:$0xff]   ;;  %v42_v14 = vld [vmem:[%s1645_s0] sm:$0x1] }
  0x18   :  { %1223 = vmatprep.subr.bf16.mxu1 %v1430_v0  ;;  %v1284_v13 = vld [vmem:[#allocation2 + $0x4] ss:$12 sps:$4 sm:$0xff]   ;;  %v1282_v16 = vld [vmem:[#allocation2] ss:$12 sps:$4 sm:$0xff]   ;;  %v1287_v17 = vld [vmem:[#allocation2 + $0x1c] ss:$12 sps:$4 sm:$0xff]  }
  0x19   :  { %v1281_v15 = vld [vmem:[%s1646_s1 + $0x50] ss:$12 sps:$4 sm:$0xff]   ;;  %v1290_v19 = vld [vmem:[#allocation2 + $0x34] ss:$12 sps:$4 sm:$0xff]   ;;  %v1288_v20 = vld [vmem:[#allocation2 + $0x30] ss:$12 sps:$4 sm:$0xff]  }
  0x1a   :  { %147 = vmatpush1.bf16.msra.mxu0 %v1271_v5  ;;  %v1285_v18 = vld [vmem:[#allocation2 + $0x18] ss:$12 sps:$4 sm:$0xff]   ;;  %v1309_v21 = vld [vmem:[#allocation2 + $0xc8] ss:$12 sps:$4 sm:$0xff]   ;;  %v1314_v24 = vld [vmem:[#allocation2 + $0xe0] ss:$12 sps:$4 sm:$0xff]  }
  0x1b   :  { %148 = vmatprep.subr.bf16.mxu0 %v1272_v6  ;;  %1224 = vmatpush3.bf16.msra.mxu1 %v1279_v9  ;;  %v1310_v22 = vld [vmem:[#allocation2 + $0x8] ss:$12 sps:$4 sm:$0xff]   ;;  %v1293_v23 = vld [vmem:[#allocation2 + $0x4c] ss:$12 sps:$4 sm:$0xff]   ;;  %v1296_v27 = vld [vmem:[#allocation2 + $0x64] ss:$12 sps:$4 sm:$0xff]  }
  0x1c   :  { %1225 = vmatprep.subr.bf16.mxu1 %v1430_v0  ;;  %v1315_v25 = vld [vmem:[#allocation2 + $0x20] ss:$12 sps:$4 sm:$0xff]   ;;  %v1291_v26 = vld [vmem:[#allocation2 + $0x48] ss:$12 sps:$4 sm:$0xff]   ;;  %v1319_v28 = vld [vmem:[#allocation2 + $0xf8] ss:$12 sps:$4 sm:$0xff]  }
  0x1d   :  { %v1320_v29 = vld [vmem:[#allocation2 + $0x38] ss:$12 sps:$4 sm:$0xff]   ;;  %v1294_v30 = vld [vmem:[#allocation2 + $0x60] ss:$12 sps:$4 sm:$0xff]   ;;  %v1299_v31 = vld [vmem:[#allocation2 + $0x7c] ss:$12 sps:$4 sm:$0xff]  }
  0x1e   :  { %149 = vmatpush1.bf16.msra.mxu0 %v1274_v8  ;;  %v1324_v32 = vld [vmem:[#allocation2 + $0x110] ss:$12 sps:$4 sm:$0xff]   ;;  %v1297_v34 = vld [vmem:[#allocation2 + $0x78] ss:$12 sps:$4 sm:$0xff]   ;;  %v1329_v35 = vld [vmem:[#allocation2 + $0x128] ss:$12 sps:$4 sm:$0xff]  }
  0x1f   :  { %150 = vmatprep.subr.bf16.mxu0 %v1275_v10  ;;  %1226 = vmatpush3.bf16.msra.mxu1 %v1280_v12  ;;  %v1325_v33 = vld [vmem:[#allocation2 + $0x50] ss:$12 sps:$4 sm:$0xff]   ;;  %v1302_v36 = vld [vmem:[#allocation2 + $0x94] ss:$12 sps:$4 sm:$0xff]   ;;  %v1305_v40 = vld [vmem:[#allocation2 + $0xac] ss:$12 sps:$4 sm:$0xff]  }
  0x20   :  { %1227 = vmatprep.subr.bf16.mxu1 %v1430_v0  ;;  %v1330_v37 = vld [vmem:[#allocation2 + $0x68] ss:$12 sps:$4 sm:$0xff]   ;;  %v1300_v38 = vld [vmem:[#allocation2 + $0x90] ss:$12 sps:$4 sm:$0xff]   ;;  %v1334_v39 = vld [vmem:[#allocation2 + $0x140] ss:$12 sps:$4 sm:$0xff]  }
  0x21   :  { %v1335_v41 = vld [vmem:[#allocation2 + $0x80] ss:$12 sps:$4 sm:$0xff]   ;;  %v1303_v42 = vld [vmem:[#allocation2 + $0xa8] ss:$12 sps:$4 sm:$0xff]   ;;  %v1308_v43 = vld [vmem:[#allocation2 + $0xc4] ss:$12 sps:$4 sm:$0xff]  }
  0x22   :  { %151 = vmatpush1.bf16.msra.mxu0 %v1278_v11  ;;  %v1306_v44 = vld [vmem:[#allocation2 + $0xc0] ss:$12 sps:$4 sm:$0xff]   ;;  %v1313_v45 = vld [vmem:[#allocation2 + $0xdc] ss:$12 sps:$4 sm:$0xff]   ;;  %v1311_v46 = vld [vmem:[#allocation2 + $0xd8] ss:$12 sps:$4 sm:$0xff]  }
  0x23   :  { %639 = vmatprep.subr.bf16.mxu0 %v1284_v13  ;;  %1228 = vmatpush3.bf16.msra.mxu1 %v1281_v15  ;;  %v1318_v47 = vld [vmem:[#allocation2 + $0xf4] ss:$12 sps:$4 sm:$0xff]   ;;  %v1316_v48 = vld [vmem:[#allocation2 + $0xf0] ss:$12 sps:$4 sm:$0xff]   ;;  %v1323_v49 = vld [vmem:[#allocation2 + $0x10c] ss:$12 sps:$4 sm:$0xff]  }
  0x24   :  { %1169 = vmatprep.subr.bf16.mxu1 %v1309_v21  ;;  %v1321_v50 = vld [vmem:[#allocation2 + $0x108] ss:$12 sps:$4 sm:$0xff]   ;;  %v1328_v51 = vld [vmem:[#allocation2 + $0x124] ss:$12 sps:$4 sm:$0xff]   ;;  %v1326_v52 = vld [vmem:[#allocation2 + $0x120] ss:$12 sps:$4 sm:$0xff]  }
  0x25   :  { %1081 = vmatmul.mubr.msk.bf16.vlgmr.msra.gmra.mrb[0].mxu0 %vm140_vm1, %v42_v14  ;;  %v1333_v53 = vld [vmem:[#allocation2 + $0x13c] ss:$12 sps:$4 sm:$0xff]   ;;  %v1331_v54 = vld [vmem:[#allocation2 + $0x138] ss:$12 sps:$4 sm:$0xff]   ;;  %v1338_v56 = vld [vmem:[#allocation2 + $0x154] ss:$12 sps:$4 sm:$0xff]  }
  0x26   :  { %640 = vmatpush1.bf16.msra.mxu0 %v1282_v16  ;;  %1230 = vmatmul.mubr.msk.bf16.vlgmr.msra.gmra.mrb[0].mxu1 %vm140_vm1, %v42_v14  ;;  %v1339_v55 = vld [vmem:[#allocation2 + $0x158] ss:$12 sps:$4 sm:$0xff]   ;;  %v1336_v58 = vld [vmem:[#allocation2 + $0x150] ss:$12 sps:$4 sm:$0xff]   ;;  %v1341_v62 = vld [vmem:[#allocation2 + $0x168] ss:$12 sps:$4 sm:$0xff]  }
  0x27   :  { %641 = vmatprep.subr.bf16.mxu0 %v1287_v17  ;;  %1170 = vmatpush3.bf16.msra.mxu1 %v1310_v22  ;;  %v1340_v57 = vld [vmem:[#allocation2 + $0x98] ss:$12 sps:$4 sm:$0xff]   ;;  %v1344_v59 = vld [vmem:[#allocation2 + $0x170] ss:$12 sps:$4 sm:$0xff]   ;;  %v1533_v3 = vshrl.u32 %v61_v2, 7  ;;  %vm629_vm2 = vcmask 1045504  }
  0x28   :  { %1171 = vmatprep.subr.bf16.mxu1 %v1314_v24  ;;  %v1343_v60 = vld [vmem:[#allocation2 + $0x16c] ss:$12 sps:$4 sm:$0xff]   ;;  %v1345_v61 = vld [vmem:[#allocation2 + $0xb0] ss:$12 sps:$4 sm:$0xff]   ;;  %v59_v5 = vld [vmem:[%s1647_s2] sm:$0x7] }
  0x29   :  { %v1348_v63 = vld [vmem:[#allocation2 + $0x184] ss:$12 sps:$4 sm:$0xff]   ;;  %v63_v4 = vsub.s32 0, %v1533_v3  ;;  %v67_v6 = vsub.s32 1, %v1533_v3  ;;  %v71_v12 = vsub.s32 2, %v1533_v3  ;;  %vm625_vm3 = vcmask 359424  }
  0x2a   :  { %642 = vmatpush1.bf16.msra.mxu0 %v1285_v18  ;;  %v1346_v22 = vld [vmem:[#allocation2 + $0x180] ss:$12 sps:$4 sm:$0xff]   ;;  %s1433_s28 = smov [#allocation5]   ;;  %vm1052_vm4 = vcmask 33792  }
  0x2b   :  { %643 = vmatprep.subr.bf16.mxu0 %v1290_v19  ;;  %1172 = vmatpush3.bf16.msra.mxu1 %v1315_v25  ;;  %v64_v7 = vrot.slane %v59_v5, %v63_v4  ;;  %v68_v8 = vrot.slane %v59_v5, %v67_v6  ;;  %v72_v19 = vrot.slane %v59_v5, %v71_v12  ;;  %s1060_s29 = sshll.u32 %s1433_s28, 4  ;;  %s1061_s29 = int_to_ptr.vmem [resolvable:$true] %s1060_s29 }
  0x2c   :  { %1173 = vmatprep.subr.bf16.mxu1 %v1319_v28  ;;  %s1401_s30 = scalar_lea.vmem %s1061_s29, 32  ;;  %p1406_p9 = scmp.lt.s32.totalorder %s1061_s29, %s1061_s29 }
  0x2d   :  { %p1402_p8 = scmp.ne.s32.totalorder %s1061_s29, %s1401_s30  ;;  %p1407_p10 = scmp.lt.s32.totalorder %s1401_s30, %s1401_s30 }
  0x2e   :  { %644 = vmatpush1.bf16.msra.mxu0 %v1288_v20 }
  0x2f   :  { %645 = vmatprep.subr.bf16.mxu0 %v1293_v23  ;;  %1174 = vmatpush3.bf16.msra.mxu1 %v1320_v29  ;;  %v1349_v23 = vld [vmem:[#allocation2 + $0x188] ss:$12 sps:$4 sm:$0xff]   ;;  %v1350_v29 = vld [vmem:[#allocation2 + $0x198] ss:$12 sps:$4 sm:$0xff]   ;;  %p1408_p11 = por %p1407_p10, %p1406_p9 }
  0x30   :  { %1175 = vmatprep.subr.bf16.mxu1 %v1324_v32  ;;  %v1356_v32 = vld [vmem:[#allocation2 + $0x1b0] ss:$12 sps:$4 sm:$0x3f]  }
  0x31   :  { %p1409_p12 = pnand %p1408_p11, %p1402_p8 }
  0x32   :  { %646 = vmatpush1.bf16.msra.mxu0 %v1291_v26  ;;  %v1352_v26 = vld [vmem:[#allocation2 + $0x19c] ss:$12 sps:$4 sm:$0xff]  }
  0x33   :  { %647 = vmatprep.subr.bf16.mxu0 %v1296_v27  ;;  %1176 = vmatpush3.bf16.msra.mxu1 %v1325_v33  ;;  %v1357_v33 = vld [vmem:[#allocation2 + $0x1b8] ss:$12 sps:$4 sm:$0x3f]  }
  0x34   :  { %1177 = vmatprep.subr.bf16.mxu1 %v1329_v35  ;;  %v631_v35 = vsel %vm629_vm2, %v1356_v32, 0 }
  0x36   :  { %648 = vmatpush1.bf16.msra.mxu0 %v1294_v30  ;;  %v1353_v30 = vld [vmem:[#allocation2 + $0x1a0] ss:$12 sps:$4 sm:$0xff]  }
  0x37   :  { %649 = vmatprep.subr.bf16.mxu0 %v1299_v31  ;;  %1178 = vmatpush3.bf16.msra.mxu1 %v1330_v37  ;;  %v1354_v31 = vld [vmem:[#allocation2 + $0x1b4] ss:$12 sps:$4 sm:$0x3f]   ;;  %v1358_v37 = vld [vmem:[%s1650_s5 + $0x40] sm:$0xff]  }
  0x38   :  { %1179 = vmatprep.subr.bf16.mxu1 %v1334_v39  ;;  %v1360_v39 = vld [vmem:[%s1650_s5 + $0x48] sm:$0xff]  }
  0x3a   :  { %650 = vmatpush1.bf16.msra.mxu0 %v1297_v34 }
  0x3b   :  { %651 = vmatprep.subr.bf16.mxu0 %v1302_v36  ;;  %1180 = vmatpush3.bf16.msra.mxu1 %v1335_v41  ;;  %v637_v36 = vsel %vm629_vm2, %v1357_v33, 0  ;;  %v1362_v41 = vld [vmem:[%s1650_s5 + $0x50] sm:$0xff]  }
  0x3c   :  { %1181 = vmatprep.subr.bf16.mxu1 %v1339_v55  ;;  %v1375_v55 = vld [vmem:[%s1650_s5 + $0x78] sm:$0xff]  }
  0x3e   :  { %652 = vmatpush1.bf16.msra.mxu0 %v1300_v38 }
  0x3f   :  { %653 = vmatprep.subr.bf16.mxu0 %v1305_v40  ;;  %1182 = vmatpush3.bf16.msra.mxu1 %v1340_v57  ;;  %v1361_v40 = vld [vmem:[%s1650_s5 + $0x8] sm:$0xff]  }
  0x40   :  { %1183 = vmatprep.subr.bf16.mxu1 %v1344_v59 }
  0x42   :  { %654 = vmatpush1.bf16.msra.mxu0 %v1303_v42  ;;  %v1363_v42 = vld [vmem:[%s1650_s5 + $0x10] sm:$0xff]  }
  0x43   :  { %655 = vmatprep.subr.bf16.mxu0 %v1308_v43  ;;  %1184 = vmatpush3.bf16.msra.mxu1 %v1345_v61  ;;  %v1364_v43 = vld [vmem:[%s1650_s5 + $0x58] sm:$0xff]   ;;  %v307_v61 = vld [vmem:[%s1649_s4] sm:$0x7] }
  0x44   :  { %1233 = vmatprep.subr.bf16.mxu1 %v1430_v0  ;;  %v316_v2 = vrot.slane %v307_v61, %v67_v6 }
  0x46   :  { %656 = vmatpush1.bf16.msra.mxu0 %v1306_v44  ;;  %v1365_v44 = vld [vmem:[%s1650_s5 + $0x18] sm:$0xff]  }
  0x47   :  { %657 = vmatprep.subr.bf16.mxu0 %v1313_v45  ;;  %v1366_v45 = vld [vmem:[%s1650_s5 + $0x60] sm:$0xff]  }
  0x4a   :  { %658 = vmatpush1.bf16.msra.mxu0 %v1311_v46  ;;  %v1367_v46 = vld [vmem:[%s1650_s5 + $0x20] sm:$0xff]  }
  0x4b   :  { %659 = vmatprep.subr.bf16.mxu0 %v1318_v47  ;;  %v1368_v47 = vld [vmem:[%s1650_s5 + $0x80] sm:$0xff]  }
  0x4e   :  { %660 = vmatpush1.bf16.msra.mxu0 %v1316_v48  ;;  %v1369_v48 = vld [vmem:[%s1650_s5 + $0x68] sm:$0xff]  }
  0x4f   :  { %661 = vmatprep.subr.bf16.mxu0 %v1323_v49  ;;  %v1370_v49 = vld [vmem:[%s1650_s5 + $0x28] sm:$0xff]  }
  0x52   :  { %662 = vmatpush1.bf16.msra.mxu0 %v1321_v50  ;;  %v1371_v50 = vld [vmem:[%s1650_s5 + $0x88] sm:$0xff]  }
  0x53   :  { %663 = vmatprep.subr.bf16.mxu0 %v1328_v51  ;;  %v1372_v51 = vld [vmem:[%s1650_s5 + $0x70] sm:$0xff]  }
  0x56   :  { %664 = vmatpush1.bf16.msra.mxu0 %v1326_v52  ;;  %v1373_v52 = vld [vmem:[%s1650_s5 + $0x30] sm:$0xff]  }
  0x57   :  { %665 = vmatprep.subr.bf16.mxu0 %v1333_v53  ;;  %v1374_v53 = vld [vmem:[%s1650_s5 + $0x90] sm:$0x3f]  }
  0x5a   :  { %666 = vmatpush1.bf16.msra.mxu0 %v1331_v54  ;;  %v969_v54 = vsel %vm629_vm2, %v1374_v53, 0 }
  0x5b   :  { %667 = vmatprep.subr.bf16.mxu0 %v1338_v56  ;;  %v1376_v56 = vld [vmem:[%s1650_s5 + $0x38] sm:$0xff]  }
  0x5e   :  { %668 = vmatpush1.bf16.msra.mxu0 %v1336_v58 }
  0x5f   :  { %669 = vmatprep.subr.bf16.mxu0 %v1343_v60 }
  0x62   :  { %670 = vmatpush1.bf16.msra.mxu0 %v1341_v62  ;;  %v320_v62 = vrot.slane %v307_v61, %v71_v12 }
  0x63   :  { %680 = vmatprep.subr.bf16.mxu0 %v1348_v63  ;;  %v312_v63 = vrot.slane %v307_v61, %v63_v4 }
  0xf8   :  { %v178_v9 = vpop.f32.mrb[0].mxu0 }
  0xf9   :  { %v179_v10 = vadd.f32 %v178_v9, %v64_v7  ;;  %v180_v11 = vpop.f32.mrb[1].mxu0  ;;  %v219_v18 = vpop.f32.mrb[0].mxu1 }
  0xfa   :  { %v181_v13 = vadd.f32 %v180_v11, %v68_v8  ;;  %v182_v14 = vpop.f32.mrb[2].mxu0  ;;  %v1231_v20 = vpop.f32.mrb[1].mxu1  ;;  %v220_v28 = vadd.f32 %v219_v18, %v72_v19 }
  0xfb   :  { %v225_v15 = vmax.f32 %v179_v10, 0.0  ;;  %v183_v16 = vpop.f32.mrb[3].mxu0  ;;  %v222_v24 = vpop.f32.mrb[2].mxu1 }
  0xfc   :  { %v226_v17 = vmax.f32 %v181_v13, 0.0  ;;  %v1232_v27 = vpop.f32.mrb[3].mxu1  ;;  %v227_v34 = vmax.f32 %v220_v28, 0.0 }
  0xfd   :  { %v228_v25 = vpack.c.bf16 %v225_v15, %v225_v15 }
  0xfe   :  { %v229_v21 = vpack.c.bf16 %v226_v17, %v226_v17  ;;  %v230_v38 = vpack.c.bf16 %v227_v34, %v227_v34 }
 0x100   :  { %671 = vmatprep.mubr.bf16.mxu0 %v229_v21  ;;  %753 = vmatprep.mubr.bf16.mxu1 %v229_v21 }
 0x101   :  { %672 = vmatmul.mubr.bf16.vlgmr.msra.gmra.mrb[4].mxu0 %v228_v25  ;;  %754 = vmatmul.mubr.bf16.vlgmr.msra.gmra.mrb[4].mxu1 %v228_v25 }
 0x102   :  { %681 = vmatpush1.bf16.msra.mxu0 %v1346_v22  ;;  %1234 = vmatpush3.bf16.msra.mxu1 %v1349_v23 }
 0x103   :  { %682 = vmatprep.subr.bf16.mxu0 %v1352_v26  ;;  %1235 = vmatprep.subr.bf16.mxu1 %v1430_v0  ;;  %v1143_v26 = vld [vmem:[%s1651_s6] ss:$0 sm:$0xff] }
 0x104   :  { %1239 = vmatprep.mubr.msk.bf16.mxu1 %vm1432_vm0, %v1430_v0  ;;  %712 = vmatprep.mubr.bf16.mxu0 %v1431_v1  ;;  %v1359_v1 = vld [vmem:[%s1650_s5] sm:$0xff]  }
 0x106   :  { %683 = vmatpush1.bf16.msra.mxu0 %v1350_v29  ;;  %1236 = vmatpush3.bf16.msra.mxu1 %v1353_v30 }
 0x107   :  { %1140 = vmatprep.subr.msk.bf16.mxu0 %vm629_vm2, %v1354_v31  ;;  %1237 = vmatprep.subr.bf16.mxu1 %v1430_v0 }
 0x10a   :  { %685 = vmatpush1.bf16.msra.mxu0 %v631_v35  ;;  %1238 = vmatpush3.bf16.msra.mxu1 %v637_v36 }
 0x10b   :  { %1195 = vmatprep.subr.bf16.mxu1 %v1358_v37  ;;  %1243 = vmatprep.subr.bf16.mxu0 %v1430_v0 }
 0x10d   :  { %1240 = vmatmul.mubr.msk.bf16.vlgmr.msra.gmra.mrb[8].mxu1 %vm625_vm3, %v230_v38  ;;  %1141 = vmatmul.mubr.msk.bf16.vlgmr.msra.gmra.mrb[4].mxu0 %vm625_vm3, %v230_v38 }
 0x10e   :  { %1196 = vmatpush3.bf16.msra.mxu1 %v1359_v1  ;;  %1249 = vmatprep.mubr.msk.bf16.mxu0 %vm1432_vm0, %v1430_v0 }
 0x10f   :  { %1197 = vmatprep.subr.bf16.mxu1 %v1360_v39  ;;  %1244 = vmatpush3.bf16.msra.mxu0 %v1368_v47 }
 0x110   :  { %1245 = vmatprep.subr.bf16.mxu0 %v1430_v0 }
 0x112   :  { %1198 = vmatpush3.bf16.msra.mxu1 %v1361_v40 }
 0x113   :  { %1199 = vmatprep.subr.bf16.mxu1 %v1362_v41  ;;  %1246 = vmatpush3.bf16.msra.mxu0 %v1371_v50 }
 0x114   :  { %1247 = vmatprep.subr.bf16.mxu0 %v1430_v0 }
 0x116   :  { %1200 = vmatpush3.bf16.msra.mxu1 %v1363_v42 }
 0x117   :  { %1201 = vmatprep.subr.bf16.mxu1 %v1364_v43  ;;  %1248 = vmatpush3.bf16.msra.mxu0 %v969_v54 }
 0x11a   :  { %1202 = vmatpush3.bf16.msra.mxu1 %v1365_v44 }
 0x11b   :  { %1203 = vmatprep.subr.bf16.mxu1 %v1366_v45 }
 0x11e   :  { %1204 = vmatpush3.bf16.msra.mxu1 %v1367_v46 }
 0x11f   :  { %1205 = vmatprep.subr.bf16.mxu1 %v1369_v48 }
 0x122   :  { %1206 = vmatpush3.bf16.msra.mxu1 %v1370_v49 }
 0x123   :  { %1207 = vmatprep.subr.bf16.mxu1 %v1372_v51 }
 0x126   :  { %1208 = vmatpush3.bf16.msra.mxu1 %v1373_v52 }
 0x127   :  { %1209 = vmatprep.subr.bf16.mxu1 %v1375_v55 }
 0x12a   :  { %1210 = vmatpush3.bf16.msra.mxu1 %v1376_v56 }
 0x1d4   :  { %v1185_v0 = vpop.f32.mrb[4].mxu1 }
 0x1d5   :  { %v1186_v57 = vpop.f32.mrb[5].mxu1 }
 0x1d6   :  { %v1187_v58 = vadd.f32 %v1186_v57, %v1185_v0  ;;  %v1188_v59 = vpop.f32.mrb[6].mxu1 }
 0x1d7   :  { %v1189_v60 = vpop.f32.mrb[7].mxu1 }
 0x1d8   :  { %v756_v5 = vadd.f32 %v1187_v58, %v320_v62 }
 0x1e0   :  { %v795_v7 = vpop.f32.mrb[8].mxu1  ;;  %v714_v8 = vpop.f32.mrb[4].mxu0 }
 0x1e1   :  { %v796_v9 = vadd.f32 %v795_v7, %v756_v5  ;;  %v1253_v10 = vadd.f32 %v714_v8, %v312_v63  ;;  %v1241_v11 = vpop.f32.mrb[9].mxu1  ;;  %v716_v13 = vpop.f32.mrb[5].mxu0 }
 0x1e2   :  { %v1254_v14 = vadd.f32 %v716_v13, %v316_v2  ;;  %v798_v15 = vpop.f32.mrb[10].mxu1  ;;  %v718_v16 = vpop.f32.mrb[6].mxu0 }
 0x1e3   :  { %v803_v17 = vmax.f32 %v796_v9, 0.0  ;;  %v801_v18 = vmax.f32 %v1253_v10, 0.0  ;;  %v1242_v19 = vpop.f32.mrb[11].mxu1  ;;  %v719_v12 = vpop.f32.mrb[7].mxu0 }
 0x1e4   :  { %v802_v20 = vmax.f32 %v1254_v14, 0.0 }
 0x1e5   :  { %v806_v21 = vpack.c.bf16 %v803_v17, %v803_v17  ;;  %v804_v22 = vpack.c.bf16 %v801_v18, %v801_v18 }
 0x1e6   :  { %v805_v4 = vpack.c.bf16 %v802_v20, %v802_v20 }
 0x1e7   :  { %1250 = vmatmul.mubr.msk.bf16.vlgmr.msra.gmra.mrb[8].mxu0 %vm625_vm3, %v806_v21 }
 0x1e8   :  { %1003 = vmatprep.mubr.bf16.mxu1 %v805_v4 }
 0x1e9   :  { %1004 = vmatmul.mubr.bf16.vlgmr.msra.gmra.mrb[12].mxu1 %v804_v22 }
 0x2ba   :  { %v1045_v3 = vpop.f32.mrb[8].mxu0 }
 0x2bb   :  { %v1251_v6 = vpop.f32.mrb[9].mxu0 }
 0x2bc   :  { %v1048_v23 = vpop.f32.mrb[10].mxu0  ;;  %v1211_v24 = vpop.f32.mrb[12].mxu1 }
 0x2bd   :  { %v1252_v25 = vpop.f32.mrb[11].mxu0  ;;  %v1212_v27 = vpop.f32.mrb[13].mxu1 }
 0x2be   :  { %v1213_v28 = vadd.f32 %v1212_v27, %v1211_v24  ;;  %v1214_v29 = vpop.f32.mrb[14].mxu1 }
 0x2bf   :  { %v1215_v30 = vpop.f32.mrb[15].mxu1 }
 0x2c0   :  { %v1006_v31 = vadd.f32 %v1213_v28, %v1143_v26 }
 0x2c2   :  { %v1046_v32 = vadd.f32 %v1045_v3, %v1006_v31 }
 0x2c4   :  { %1377 = vtanh.f32 %v1046_v32 }
 0x2ce   :  { %v1378_v33 = vpop.eup %1377 }
 0x2cf   :  { %1053 = vst.msk [vmem:[#allocation5] sm:$0x3] %vm1052_vm4, %v1378_v33 }
 0x2d0   :  { %1412 = shalt.err (!%p1409_p12)
}
 0x2d1   :  { %s1413_s9 = scalar_lea.hbm %s1652_s7, 32 }
 0x2d2   :  { %p1414_p13 = scmp.ne.s32.totalorder %s1652_s7, %s1413_s9  ;;  %p1417_p0 = scmp.lt.u32.totalorder %s1413_s9, %s1652_s7 }
 0x2d4   :  { %p1419_p1 = pnand %p1417_p0, %p1414_p13 }
 0x2d6   :  { %1422 = shalt.err (!%p1419_p1)
}
 0x2d7   :  { %1063 = dma.vmem_to_hbm [thread:$0]  %s1061_s29, 32, %s1652_s7, [#allocation4]  }
 0x2d8   :  { %1425 = dma.done.wait [#allocation4], 32  }
 0x2d9   :  { %1426 = vsyncadd [#allocation4], 4294967264 }
 0x2da   :  { %1067 = vsyncpa [#allocation3], 1 }
 0x2db   :  { %1068 = vsyncpa [#allocation4], 1 }

</bundles_post_ra>
